<compile_context>
chip_gen: v7x
topology: tpu7x:2x2x1
jax: 0.10.0
libtpu: 0.0.40
codegen_flags: <defaults>
</compile_context>

<pallas_src>
import math
import functools

import jax
import jax.numpy as jnp
from jax import lax
from jax.experimental import pallas as pl
from jax.experimental.pallas import tpu as pltpu


def _sdpa_kernel(q_ref, k_ref, v_ref, *rest, scale, has_mask, bf16_softmax):
    """One (batch, head, q-tile) step: full keys/values, TQ queries."""
    if has_mask:
        mask_ref, out_ref, attn_ref = rest
    else:
        out_ref, attn_ref = rest
        mask_ref = None

    q = q_ref[0, 0]          # (TQ, D)  native dtype
    k = k_ref[0, 0]          # (Sk, D)  native dtype
    v = v_ref[0, 0]          # (Sk, D)  native dtype

    # Fold 1/sqrt(D) into q (TQ*D multiplies instead of TQ*Sk).
    q = q * jnp.asarray(scale, dtype=q.dtype)

    # q @ k^T: contract last dims of both operands -> no materialized K
    # transpose, MXU handles the operand feed; accumulate in f32.
    scores = lax.dot_general(
        q, k, (((1,), (1,)), ((), ())),
        preferred_element_type=jnp.float32)                      # (TQ, Sk) f32

    if has_mask:
        # mask block is (1, 1, mq, mk) with mq in {1, TQ}, mk in {1, Sk};
        # broadcast in-register; masked_fill(-10000.0) semantics.
        mask = jnp.broadcast_to(mask_ref[0, 0], scores.shape)
        scores = jnp.where(mask == 0, jnp.float32(-10000.0), scores)

    # Numerically stable softmax along the key axis.
    m = jnp.max(scores, axis=-1, keepdims=True)

    if bf16_softmax:
        # v6e/v7x: bf16 EUP/VPU run packed rate; exp in bf16, f32 denominator.
        p = jnp.exp((scores - m).astype(jnp.bfloat16))           # (TQ, Sk) bf16
        denom = jnp.sum(p, axis=-1, keepdims=True,
                        dtype=jnp.float32)                       # (TQ, 1) f32
        inv = pl.reciprocal(denom, approx=True)                  # EUP, free slot
        # Unnormalized probabilities feed the MXU; normalize the small
        # (TQ, D) result in f32 afterwards.
        out = lax.dot_general(
            p, v, (((1,), (0,)), ((), ())),
            preferred_element_type=jnp.float32)                  # (TQ, D) f32
        out = out * inv
        attn_lo = p * inv.astype(p.dtype)                        # bf16 packed mul
        out_ref[0, 0] = out.astype(out_ref.dtype)
        attn_ref[0, 0] = attn_lo.astype(attn_ref.dtype)
    else:
        e = jnp.exp(scores - m)                                  # (TQ, Sk) f32
        denom = jnp.sum(e, axis=-1, keepdims=True)               # (TQ, 1)  f32
        if attn_ref.dtype == jnp.float32:
            inv = 1.0 / denom            # TQ exact divides (per-row reciprocal)
        else:
            inv = pl.reciprocal(denom, approx=True)
        attn = e * inv                                           # (TQ, Sk) f32
        # Cast once; reuse for both the matmul operand and the weights store.
        attn_lo = attn.astype(v.dtype)
        out = lax.dot_general(
            attn_lo, v, (((1,), (0,)), ((), ())),
            preferred_element_type=jnp.float32)                  # (TQ, D) f32
        out_ref[0, 0] = out.astype(out_ref.dtype)
        if attn_ref.dtype == attn_lo.dtype:
            attn_ref[0, 0] = attn_lo
        else:
            attn_ref[0, 0] = attn.astype(attn_ref.dtype)


def _chip_vmem_and_kind():
    """Physical VMEM capacity (bytes) and a lowercase device-kind string."""
    kind = ""
    try:
        kind = jax.devices()[0].device_kind.lower()
    except Exception:
        pass
    cap = None
    try:
        cap = int(getattr(pltpu.get_tpu_info(), "vmem_capacity_bytes", 0))
    except Exception:
        cap = None
    if not cap or cap <= 0:
        cap = (64 << 20) if "v7" in kind else (128 << 20)
    return cap, kind


def scaled_dot_product_attention(q, k, v, mask=None, *, q_block_size=None):
    """Pallas implementation of the PyTorch ScaledDotProductAttention.forward.

    q: (B, H, Sq, D), k/v: (B, H, Sk, D)
    mask (optional): broadcastable to (B, H, Sq, Sk); positions where mask == 0
    get -10000.0 before softmax.  Returns (out, attn_weights) with shapes
    (B, H, Sq, D), (B, H, Sq, Sk), both in q.dtype.
    """
    B, H, Sq, D = q.shape
    Sk = k.shape[2]
    scale = 1.0 / math.sqrt(D)

    esz = jnp.dtype(q.dtype).itemsize
    attn_esz = esz                       # attn weights returned in q.dtype
    sub = max(8, 32 // esz)              # sublane tile: 8 f32, 16 bf16, 32 int8

    # ---- normalize the mask shape first (its layout influences tq/budget) ---
    mask_arr = None
    mb = mh = mq = mk = 1
    if mask is not None:
        mask_arr = jnp.asarray(mask)
        if mask_arr.ndim > 4:
            raise ValueError("mask must have at most 4 dims")
        mask_arr = mask_arr.reshape((1,) * (4 - mask_arr.ndim) + mask_arr.shape)
        mb, mh, mq, mk = mask_arr.shape
        if not (mb in (1, B) and mh in (1, H) and mq in (1, Sq) and mk in (1, Sk)):
            # Rare non-standard shape: fall back to a full broadcast.
            mask_arr = jnp.broadcast_to(mask_arr, (B, H, Sq, Sk))
            mb, mh, mq, mk = mask_arr.shape

    # ---- chip-aware VMEM budget ---------------------------------------------
    cap, kind = _chip_vmem_and_kind()
    budget = (cap * 25) // 32            # ~100 MiB on v5e/v6e, ~50 MiB on v7x

    def blk_bytes(tq_):
        b = 2 * tq_ * D * esz            # q block + out block
        b += 2 * Sk * D * esz            # k + v blocks
        b += tq_ * Sk * attn_esz         # attn-weights block (the VMEM hog)
        if mask_arr is not None:
            b += (tq_ if mq == Sq else 1) * mk * 4   # conservative (int32) mask
        return b

    # ---- query tile: largest candidate (<= 512) fitting the budget ----------
    if q_block_size is not None:
        tq = int(q_block_size)
    elif Sq <= 512:
        tq = Sq
    else:
        cands = [c for c in (512, 256, 128, 64, 32, 16, 8)
                 if Sq % c == 0 and c % sub == 0]
        if not cands:
            tq = Sq
        else:
            tq = cands[-1]
            for c in cands:
                if 2 * blk_bytes(c) + (4 << 20) <= budget:
                    tq = c
                    break
    if Sq % tq != 0 or (tq != Sq and tq % sub != 0):
        raise ValueError(f"q_block_size={tq} must divide Sq={Sq} and be a "
                         f"multiple of {sub} (or equal to Sq)")
    n_q = Sq // tq
    grid = (B, H, n_q)

    # ---- BlockSpecs ----------------------------------------------------------
    q_spec = pl.BlockSpec((1, 1, tq, D), lambda b, h, i: (b, h, i, 0))
    k_spec = pl.BlockSpec((1, 1, Sk, D), lambda b, h, i: (b, h, 0, 0))
    v_spec = pl.BlockSpec((1, 1, Sk, D), lambda b, h, i: (b, h, 0, 0))
    out_spec = pl.BlockSpec((1, 1, tq, D), lambda b, h, i: (b, h, i, 0))
    attn_spec = pl.BlockSpec((1, 1, tq, Sk), lambda b, h, i: (b, h, i, 0))

    in_specs = [q_spec, k_spec, v_spec]
    inputs = [q, k, v]
    mask_bytes = 0

    if mask_arr is not None:
        # int8 mask (4x less HBM read than int32) unless its query axis is
        # tiled with a tq that violates int8 sublane tiling (32).
        if mq == Sq and tq != Sq and tq % 32 != 0:
            mask_dtype = jnp.int32
        else:
            mask_dtype = jnp.int8
        mask_arr = (mask_arr != 0).astype(mask_dtype)
        mq_blk = tq if mq == Sq else 1

        def mask_index_map(b, h, i, _mb=mb, _mh=mh, _mq=mq):
            return (b if _mb != 1 else 0,
                    h if _mh != 1 else 0,
                    i if _mq == Sq else 0,
                    0)

        in_specs.append(pl.BlockSpec((1, 1, mq_blk, mk), mask_index_map))
        inputs.append(mask_arr)
        mask_bytes = int(mask_arr.size) * jnp.dtype(mask_dtype).itemsize

    # ---- outputs (attn weights in q.dtype, matching the torch module) -------
    out_shapes = (
        jax.ShapeDtypeStruct((B, H, Sq, D), q.dtype),
        jax.ShapeDtypeStruct((B, H, Sq, Sk), q.dtype),
    )

    # ---- compiler params / cost estimate -------------------------------------
    need = 2 * blk_bytes(tq) + (4 << 20)
    vmem_limit = int(min(max(need, 32 << 20), int(cap * 0.9)))
    compiler_params = pltpu.CompilerParams(
        # Inner (q-tile) axis stays on one core so K/V blocks are fetched once
        # per (b, h); B and H are the parallel axes for megacore sharding.
        dimension_semantics=("parallel", "parallel", "arbitrary"),
        vmem_limit_bytes=vmem_limit,
    )
    cost_estimate = pl.CostEstimate(
        flops=4 * B * H * Sq * Sk * D,
        transcendentals=B * H * Sq * Sk,
        bytes_accessed=(B * H * Sq * D * esz            # q read
                        + 2 * B * H * Sk * D * esz      # k, v reads
                        + B * H * Sq * D * esz          # out write
                        + B * H * Sq * Sk * attn_esz    # attn write
                        + mask_bytes),
    )

    # bf16 softmax epilogue only where the EUP/VPU run bf16 (v6e / v7x).
    use_bf16_softmax = (q.dtype == jnp.bfloat16 and v.dtype == jnp.bfloat16
                        and ("v6" in kind or "v7" in kind))

    kernel = functools.partial(_sdpa_kernel, scale=scale,
                               has_mask=mask_arr is not None,
                               bf16_softmax=use_bf16_softmax)

    return pl.pallas_call(
        kernel,
        out_shape=out_shapes,
        grid=grid,
        in_specs=in_specs,
        out_specs=(out_spec, attn_spec),
        compiler_params=compiler_params,
        cost_estimate=cost_estimate,
    )(*inputs)


def _reference(q, k, v, mask=None):
    D = q.shape[-1]
    qf, kf, vf = (x.astype(jnp.float32) for x in (q, k, v))
    scores = jnp.einsum("bhqd,bhkd->bhqk", qf, kf) / math.sqrt(D)
    if mask is not None:
        scores = jnp.where(mask == 0, -10000.0, scores)
    attn = jax.nn.softmax(scores, axis=-1)
    out = jnp.einsum("bhqk,bhkd->bhqd", attn, vf)
    return out, attn


if __name__ == "__main__":
    key = jax.random.PRNGKey(0)
    kq, kk, kv, km1, km2 = jax.random.split(key, 5)
    B, H, S, D = 2, 4, 16, 32
    q = jax.random.normal(kq, (B, H, S, D), dtype=jnp.float32)
    k = jax.random.normal(kk, (B, H, S, D), dtype=jnp.float32)
    v = jax.random.normal(kv, (B, H, S, D), dtype=jnp.float32)

    # 1) no mask, single q block per (b, h)
    out, attn = scaled_dot_product_attention(q, k, v)
    jax.block_until_ready((out, attn))
    ref_out, ref_attn = _reference(q, k, v)
    assert jnp.allclose(out, ref_out, atol=1e-5, rtol=1e-5)
    assert jnp.allclose(attn, ref_attn, atol=1e-5, rtol=1e-5)

    # 2) full (B, H, S, S) mask, query axis tiled into blocks of 8
    #    (exercises the int32 mask fallback: tq=8 is not a multiple of 32).
    mask_full = (jax.random.uniform(km1, (B, H, S, S)) > 0.2).astype(jnp.int32)
    out_m, attn_m = scaled_dot_product_attention(q, k, v, mask_full,
                                                 q_block_size=8)
    jax.block_until_ready((out_m, attn_m))
    ref_out_m, ref_attn_m = _reference(q, k, v, mask_full)
    assert jnp.allclose(out_m, ref_out_m, atol=1e-5, rtol=1e-5)
    assert jnp.allclose(attn_m, ref_attn_m, atol=1e-5, rtol=1e-5)

    # 3) broadcastable (B, 1, 1, S) mask: int8 stream, block reused across the
    #    head / q-tile axes, broadcast happens inside the kernel.
    mask_b = (jax.random.uniform(km2, (B, 1, 1, S)) > 0.3).astype(jnp.int32)
    out_b, attn_b = scaled_dot_product_attention(q, k, v, mask_b)
    jax.block_until_ready((out_b, attn_b))
    ref_out_b, ref_attn_b = _reference(q, k, v, mask_b)
    assert jnp.allclose(out_b, ref_out_b, atol=1e-5, rtol=1e-5)
    assert jnp.allclose(attn_b, ref_attn_b, atol=1e-5, rtol=1e-5)

    # 4) bf16 smoke test: native-dtype MXU path; bf16 exp epilogue on v6e/v7x.
    qb, kb, vb = (x.astype(jnp.bfloat16) for x in (q, k, v))
    out_bf, attn_bf = scaled_dot_product_attention(qb, kb, vb)
    jax.block_until_ready((out_bf, attn_bf))
    ref_out_bf, ref_attn_bf = _reference(qb, kb, vb)
    assert out_bf.dtype == jnp.bfloat16 and attn_bf.dtype == jnp.bfloat16
    assert jnp.allclose(out_bf.astype(jnp.float32), ref_out_bf,
                        atol=1e-1, rtol=1e-1)
    assert jnp.allclose(attn_bf.astype(jnp.float32), ref_attn_bf,
                        atol=1e-1, rtol=1e-1)

    print("KERNEL_OK")
</pallas_src>

<mosaic_0001>
module attributes {stable_mosaic.version = 11 : i64} {
  func.func @_sdpa_kernel(%arg0: i32, %arg1: i32, %arg2: i32, %arg3: memref<1x1x16x32xf32, #tpu.memory_space<vmem>>, %arg4: memref<1x1x16x32xf32, #tpu.memory_space<vmem>>, %arg5: memref<1x1x16x32xf32, #tpu.memory_space<vmem>>, %arg6: memref<1x1x16x32xf32, #tpu.memory_space<vmem>>, %arg7: memref<1x1x16x16xf32, #tpu.memory_space<vmem>>) attributes {dimension_semantics = [#tpu.dimension_semantics<parallel>, #tpu.dimension_semantics<parallel>, #tpu.dimension_semantics<arbitrary>], iteration_bounds = array<i64: 2, 4, 1>, scalar_prefetch = 0 : i64, scratch_operands = 0 : i64, tpu.core_type = #tpu.core_type<tc>, window_params = [{transform_indices = @transform_0, window_bounds = array<i64: 1, 1, 16, 32>}, {transform_indices = @transform_1, window_bounds = array<i64: 1, 1, 16, 32>}, {transform_indices = @transform_2, window_bounds = array<i64: 1, 1, 16, 32>}, {transform_indices = @transform_3, window_bounds = array<i64: 1, 1, 16, 32>}, {transform_indices = @transform_4, window_bounds = array<i64: 1, 1, 16, 16>}]} {
    %c0 = arith.constant 0 : index
    %c0_0 = arith.constant 0 : index
    %c0_1 = arith.constant 0 : index
    %c0_2 = arith.constant 0 : index
    %0 = vector.load %arg3[%c0, %c0_0, %c0_1, %c0_2] : memref<1x1x16x32xf32, #tpu.memory_space<vmem>>, vector<1x1x16x32xf32>
    %1 = vector.shape_cast %0 : vector<1x1x16x32xf32> to vector<16x32xf32>
    %c0_3 = arith.constant 0 : index
    %c0_4 = arith.constant 0 : index
    %c0_5 = arith.constant 0 : index
    %c0_6 = arith.constant 0 : index
    %2 = vector.load %arg4[%c0_3, %c0_4, %c0_5, %c0_6] : memref<1x1x16x32xf32, #tpu.memory_space<vmem>>, vector<1x1x16x32xf32>
    %3 = vector.shape_cast %2 : vector<1x1x16x32xf32> to vector<16x32xf32>
    %c0_7 = arith.constant 0 : index
    %c0_8 = arith.constant 0 : index
    %c0_9 = arith.constant 0 : index
    %c0_10 = arith.constant 0 : index
    %4 = vector.load %arg5[%c0_7, %c0_8, %c0_9, %c0_10] : memref<1x1x16x32xf32, #tpu.memory_space<vmem>>, vector<1x1x16x32xf32>
    %5 = vector.shape_cast %4 : vector<1x1x16x32xf32> to vector<16x32xf32>
    %cst = arith.constant 0.176776692 : f32
    %6 = vector.broadcast %cst : f32 to vector<16x32xf32>
    %7 = arith.mulf %1, %6 : vector<16x32xf32>
    %cst_11 = arith.constant dense<0.000000e+00> : vector<16x16xf32>
    %8 = tpu.matmul %7, %3, %cst_11 {dimension_numbers = #tpu.dot_dimension_numbers<[1], [1], [0], [0], [0, 0, 1, 0], [], []>} : vector<16x32xf32>, vector<16x32xf32>, vector<16x16xf32> -> vector<16x16xf32>
    %cst_12 = arith.constant dense<0xFF800000> : vector<16xf32>
    %9 = vector.multi_reduction <maximumf>, %8, %cst_12 [1] : vector<16x16xf32> to vector<16xf32>
    %10 = vector.shape_cast %9 : vector<16xf32> to vector<16x1xf32>
    %11 = vector.broadcast %10 : vector<16x1xf32> to vector<16x16xf32>
    %12 = arith.subf %8, %11 : vector<16x16xf32>
    %13 = math.exp %12 : vector<16x16xf32>
    %cst_13 = arith.constant dense<0.000000e+00> : vector<16xf32>
    %14 = vector.multi_reduction <add>, %13, %cst_13 [1] : vector<16x16xf32> to vector<16xf32>
    %15 = vector.shape_cast %14 : vector<16xf32> to vector<16x1xf32>
    %cst_14 = arith.constant 1.000000e+00 : f32
    %16 = vector.broadcast %cst_14 : f32 to vector<16x1xf32>
    %17 = arith.divf %16, %15 : vector<16x1xf32>
    %18 = vector.broadcast %17 : vector<16x1xf32> to vector<16x16xf32>
    %19 = arith.mulf %13, %18 : vector<16x16xf32>
    %cst_15 = arith.constant dense<0.000000e+00> : vector<16x32xf32>
    %20 = tpu.matmul %19, %5, %cst_15 {dimension_numbers = #tpu.dot_dimension_numbers<[1], [0], [0], [1], [0, 0, 1, 1], [], []>} : vector<16x16xf32>, vector<16x32xf32>, vector<16x32xf32> -> vector<16x32xf32>
    %c0_16 = arith.constant 0 : index
    %c0_17 = arith.constant 0 : index
    %c0_18 = arith.constant 0 : index
    %c0_19 = arith.constant 0 : index
    %21 = vector.load %arg6[%c0_16, %c0_17, %c0_18, %c0_19] : memref<1x1x16x32xf32, #tpu.memory_space<vmem>>, vector<1x1x16x32xf32>
    %22 = vector.shape_cast %21 : vector<1x1x16x32xf32> to vector<16x32xf32>
    %23 = vector.shape_cast %20 : vector<16x32xf32> to vector<1x1x16x32xf32>
    tpu.vector_store %arg6[%c0_16, %c0_17, %c0_18, %c0_19], %23 {strides = array<i32>} : memref<1x1x16x32xf32, #tpu.memory_space<vmem>>, vector<1x1x16x32xf32>,
    %c0_20 = arith.constant 0 : index
    %c0_21 = arith.constant 0 : index
    %c0_22 = arith.constant 0 : index
    %c0_23 = arith.constant 0 : index
    %24 = vector.load %arg7[%c0_20, %c0_21, %c0_22, %c0_23] : memref<1x1x16x16xf32, #tpu.memory_space<vmem>>, vector<1x1x16x16xf32>
    %25 = vector.shape_cast %24 : vector<1x1x16x16xf32> to vector<16x16xf32>
    %26 = vector.shape_cast %19 : vector<16x16xf32> to vector<1x1x16x16xf32>
    tpu.vector_store %arg7[%c0_20, %c0_21, %c0_22, %c0_23], %26 {strides = array<i32>} : memref<1x1x16x16xf32, #tpu.memory_space<vmem>>, vector<1x1x16x16xf32>,
    return
  }
  func.func @transform_0(%arg0: i32, %arg1: i32, %arg2: i32) -> (i32, i32, i32, i32) {
    %c0_i32 = arith.constant 0 : i32
    %c0_i32_0 = arith.constant 0 : i32
    return %arg0, %arg1, %arg2, %c0_i32 : i32, i32, i32, i32
  }
  func.func @transform_1(%arg0: i32, %arg1: i32, %arg2: i32) -> (i32, i32, i32, i32) {
    %c0_i32 = arith.constant 0 : i32
    %c0_i32_0 = arith.constant 0 : i32
    %c0_i32_1 = arith.constant 0 : i32
    return %arg0, %arg1, %c0_i32, %c0_i32_0 : i32, i32, i32, i32
  }
  func.func @transform_2(%arg0: i32, %arg1: i32, %arg2: i32) -> (i32, i32, i32, i32) {
    %c0_i32 = arith.constant 0 : i32
    %c0_i32_0 = arith.constant 0 : i32
    %c0_i32_1 = arith.constant 0 : i32
    return %arg0, %arg1, %c0_i32, %c0_i32_0 : i32, i32, i32, i32
  }
  func.func @transform_3(%arg0: i32, %arg1: i32, %arg2: i32) -> (i32, i32, i32, i32) {
    %c0_i32 = arith.constant 0 : i32
    %c0_i32_0 = arith.constant 0 : i32
    return %arg0, %arg1, %arg2, %c0_i32 : i32, i32, i32, i32
  }
  func.func @transform_4(%arg0: i32, %arg1: i32, %arg2: i32) -> (i32, i32, i32, i32) {
    %c0_i32 = arith.constant 0 : i32
    %c0_i32_0 = arith.constant 0 : i32
    return %arg0, %arg1, %arg2, %c0_i32 : i32, i32, i32, i32
  }
}

</mosaic_0001>

<bundles_post_ra>
// kernel: tpu_custom_call.1
= control target key start
LH: loop header
LB: loop body
LE: loop exit
PB: predicated region body
PF: predicated region fallthrough
CT: control target
= control target key end

     0   :  { %s1580_s0 = inlined_call_operand.hbm [shape: f32[2,4,16,32], index: 0, kind: input, shape index: {}]   ;;  %s1581_s1 = inlined_call_operand.hbm [shape: f32[2,4,16,32], index: 1, kind: input, shape index: {}]   ;;  %s1582_s2 = inlined_call_operand.hbm [shape: f32[2,4,16,32], index: 2, kind: input, shape index: {}]   ;;  %s1583_s3 = inlined_call_operand.hbm [shape: f32[2,4,16,32], index: 3, kind: output, shape index: {0}]   ;;  %s1584_s4 = inlined_call_operand.hbm [shape: f32[2,4,16,16], index: 4, kind: output, shape index: {1}]  }
   0x1   :  { %1596 = sst [smem:[#allocation20_spill]] %s1580_s0 }
   0x2   :  { %1597 = sst [smem:[#allocation21_spill]] %s1581_s1 }
   0x3   :  { %10 = vsyncpa [#allocation3], 0 }
   0x4   :  { %12 = vsyncpa [#allocation3 + $0x1], 0 }
   0x5   :  { %13 = vsyncpa [#allocation6], 0 }
   0x6   :  { %15 = vsyncpa [#allocation6 + $0x1], 0 }
   0x7   :  { %16 = vsyncpa [#allocation4], 0 }
   0x8   :  { %18 = vsyncpa [#allocation4 + $0x1], 0 }
   0x9   :  { %19 = vsyncpa [#allocation10], 0 }
   0xa   :  { %21 = vsyncpa [#allocation10 + $0x1], 0  ;;  %s1217_s15 = smov 0   ;;  %s1219_s16 = smov 0  }
   0xb   :  { %s1221_s17 = smov 0   ;;  %s1223_s18 = smov 0  }
   0xc   :  { %s1225_s19 = smov 0   ;;  %s1227_s20 = smov 0  }
   0xd   :  { %s1229_s21 = smov 0   ;;  %s1231_s22 = smov 0  }
   0xe LB: > { %1598 = sst [smem:[#allocation15_spill]] %s1173_s20  ;;  %s1258_s23 = sadd.s32 4294967295, %s1181_s22   ;;  %s1181_s22 = sphi %s1231_s22, %s27_s22   ;;  %s1177_s21 = sphi %s1229_s21, %s1624_s21   ;;  %s1173_s20 = sphi %s1227_s20, %s1623_s20   ;;  %s1169_s19 = sphi %s1225_s19, %s1622_s19   ;;  %s1165_s18 = sphi %s1223_s18, %s1621_s18   ;;  %s1161_s17 = sphi %s1221_s17, %s1627_s17   ;;  %s1157_s16 = sphi %s1219_s16, %s1626_s16   ;;  %s1153_s15 = sphi %s1217_s15, %s1625_s15  }
   0xf   : > { %1599 = sst [smem:[#allocation16_spill]] %s1177_s21  ;;  %s783_s24 = sadd.s32 4294967294, %s1181_s22  }
  0x10   : > { %s42_s25 = sadd.s32 1, %s1173_s20  ;;  %s46_s26 = sadd.s32 1, %s1177_s21 }
  0x11   : > { %p44_p0 = scmp.ge.s32.totalorder %s42_s25, 4  ;;  %s57_s27 = sadd.s32 1, %s1161_s17 }
  0x12   : > { %p64_p1 = scmp.ne.s32.totalorder %s1161_s17, %s1157_s16  ;;  %p65_p2 = scmp.eq.s32.totalorder %s1181_s22, 0 }
  0x13   : > { %s1629_s25 = smov (%p44_p0, %s42_s25), 0  ;;  %s1631_s26 = smov (!%p44_p0, %s46_s26), %s1177_s21 }
  0x14   : > { %1600 = sst [smem:[#allocation17_spill]] %s1629_s25  ;;  %s51_s28 = ssub.s32 %s1173_s20, %s1629_s25 }
  0x15   : > { %p1272_p3 = por %p65_p2, %p64_p1  ;;  %p48_p4 = scmp.ge.s32.totalorder %s1631_s26, 2 }
  0x16   : > { %p70_p5 = scmp.ne.s32.totalorder %s1157_s16, %s1153_s15  ;;  %p71_p6 = scmp.eq.s32.totalorder %s1258_s23, 0 }
  0x17   : > { %p154_p7 = scmp.eq.s32.totalorder %s1258_s23, 7  ;;  %s1633_s26 = smov (%p48_p4, %s1631_s26), 0 }
  0x18   : > { %1602 = sst [smem:[#allocation18_spill]] %s1633_s26  ;;  %p1282_p8 = por %p71_p6, %p70_p5 }
  0x19   : > { %p1286_p9 = por %p154_p7, %p64_p1  ;;  %s50_s6 = ssub.s32 %s1177_s21, %s1633_s26 }
  0x1a   : > { %s1603_s30 = scalar_select %p1282_p8, 1, 0 }
  0x1b   : > { %s1604_s5 = scalar_select %p1286_p9, 1, 0 }
  0x1c   : > { %p160_p10 = scmp.eq.s32.totalorder %s783_s24, 7  ;;  %s52_s7 = sor.u32 %s51_s28, %s50_s6 }
  0x1d   : > { %p55_p11 = scmp.eq.s32.totalorder %s52_s7, 0  ;;  %p879_p13 = scmp.lt.s32.totalorder %s1181_s22, 8 }
  0x1e   : > { %p1292_p12 = por %p160_p10, %p70_p5  ;;  %s1586_s9 = sand.u32 1, %s1161_s17  }
  0x1f   : > { %s1299_s10 = scalar_select %p55_p11, %s1161_s17, %s57_s27  }
  0x20   : > { %s1605_s8 = scalar_select %p1292_p12, 1, 0 }
  0x21   : > { %1606 = sst [smem:[#allocation19_spill]] %s1299_s10  ;;  %s1303_s11 = sshll.u32 %s1586_s9, 4 }
  0x22   : > { %s787_s12 = sshll.u32 %s1173_s20, 1  ;;  %s788_s13 = sshll.u32 %s1177_s21, 3 }
  0x23   : > { %p1309_p0 = pnand %p879_p13, %p1272_p3  ;;  %s222_s24 = sadd.s32 %s788_s13, %s787_s12 }
  0x24   : > { %s1313_s28 = sshll.u32 %s222_s24, 7  ;;  %s235_s6 = sand.u32 1, %s1181_s22  }
  0x25   : > { %s1608_s1 = sld [smem:[#allocation21_spill]]  ;;  %s239_s29 = scalar_lea.vmem [#allocation5], %s1303_s11 }
  0x26   : > { %s248_s9 = sshll.u32 %s239_s29, 4  ;;  %s1326_s25 = scalar_lea.sflag [#allocation6], %s235_s6  ;;  %s1323_s9 = int_to_ptr.vmem [resolvable:$true] %s248_s9 }
  0x27   : > { %p1332_p3 = pneg %p1309_p0 }
  0x2b   : > { %s1320_s26 = scalar_lea.hbm %s1608_s1, %s1313_s28  ;;  %s962_s27 = scalar_lea.hbm %s1608_s1, 2048 }
  0x2c   : > { %s957_s12 = scalar_lea.hbm %s1320_s26, 256  ;;  %p963_p6 = scmp.lt.u32.totalorder %s1320_s26, %s1608_s1 }
  0x2d   : > { %p958_p2 = scmp.ne.s32.totalorder %s1320_s26, %s957_s12  ;;  %p964_p7 = scmp.lt.u32.totalorder %s962_s27, %s957_s12 }
  0x2e   : > { %p966_p11 = scmp.lt.u32.totalorder %s957_s12, %s1320_s26 }
  0x2f   : > { %p960_p4 = pnand %p1332_p3, %p958_p2  ;;  %p965_p10 = por %p964_p7, %p963_p6 }
  0x31   : > { %p961_p5 = pneg %p960_p4  ;;  %p967_p13 = por %p966_p11, %p965_p10 }
  0x33   : > { %p968_p1 = pnand %p967_p13, %p961_p5 }
  0x35   : > { %971 = shalt.err (!%p968_p1)
}
  0x36   : > { %s972_s6 = scalar_lea.vmem %s1323_s9, 256  ;;  %s1183_s24 = smov [#allocation5]  }
  0x37   : > { %p973_p2 = scmp.ne.s32.totalorder %s1323_s9, %s972_s6  ;;  %s977_s7 = sshll.u32 %s1183_s24, 4  ;;  %s978_s7 = int_to_ptr.vmem [resolvable:$false] %s977_s7 }
  0x38   : > { %s979_s21 = scalar_lea.vmem %s978_s7, 512  ;;  %p980_p9 = scmp.lt.s32.totalorder %s1323_s9, %s978_s7 }
  0x39   : > { %p975_p4 = pnand %p973_p2, %p1332_p3  ;;  %p981_p8 = scmp.lt.s32.totalorder %s979_s21, %s972_s6 }
  0x3b   : > { %p976_p12 = pneg %p975_p4  ;;  %p982_p6 = por %p981_p8, %p980_p9 }
  0x3d   : > { %p983_p7 = pnand %p982_p6, %p976_p12 }
  0x3f   : > { %986 = shalt.err (!%p983_p7)
}
  0x40   : > { %s1591_s12 = smov 128   ;;  %s1593_s27 = smov 8  }
  0x41   : > { %868 = dma.hbm_to_vmem [thread:$0]  (!%p1309_p0), %s1320_s26, 256, %s1323_s9, %s1326_s25, %s1591_s12, %s1591_s12, %s1593_s27  }
  0x42   : > { %p279_p8 = scmp.lt.s32.totalorder %s1181_s22, 9  ;;  %p1610_p9 = scmp.ge.s32.totalorder %s1181_s22, 1 }
  0x43   : > { %s1612_s0 = sld [smem:[#allocation20_spill]]  ;;  %s214_s21 = scalar_lea.vmem [#allocation2], %s1303_s11 }
  0x44   : > { %p1362_p12 = pnand %p1610_p9, %p279_p8  ;;  %s225_s1 = sshll.u32 %s214_s21, 4  ;;  %s1373_s1 = int_to_ptr.vmem [resolvable:$true] %s225_s1 }
  0x45   : > { %s1613_s26 = sand.u32 1, %s1161_s17  }
  0x46   : > { %s1611_s29 = scalar_select %p1362_p12, 1, 0 }
  0x47   : > { %s1377_s9 = scalar_lea.sflag [#allocation3], %s1613_s26 }
  0x49   : > { %s1370_s7 = scalar_lea.hbm %s1612_s0, %s1313_s28  ;;  %s992_s24 = scalar_lea.hbm %s1612_s0, 2048 }
  0x4a   : > { %s987_s12 = scalar_lea.hbm %s1370_s7, 256  ;;  %p993_p11 = scmp.lt.u32.totalorder %s1370_s7, %s1612_s0 }
  0x4b   : > { %p988_p1 = scmp.ne.s32.totalorder %s1370_s7, %s987_s12  ;;  %p994_p13 = scmp.lt.u32.totalorder %s992_s24, %s987_s12 }
  0x4c   : > { %p996_p4 = scmp.lt.u32.totalorder %s987_s12, %s1370_s7 }
  0x4d   : > { %p990_p5 = pnand %p988_p1, %p1332_p3  ;;  %p995_p2 = por %p994_p13, %p993_p11 }
  0x4f   : > { %p991_p10 = pneg %p990_p5  ;;  %p997_p6 = por %p996_p4, %p995_p2 }
  0x51   : > { %p998_p7 = pnand %p997_p6, %p991_p10 }
  0x53   : > { %1001 = shalt.err (!%p998_p7)
}
  0x54   : > { %s1002_s21 = scalar_lea.vmem %s1373_s1, 256  ;;  %s1186_s27 = smov [#allocation2]  }
  0x55   : > { %p1003_p8 = scmp.ne.s32.totalorder %s1373_s1, %s1002_s21  ;;  %s1007_s26 = sshll.u32 %s1186_s27, 4  ;;  %s1008_s26 = int_to_ptr.vmem [resolvable:$false] %s1007_s26 }
  0x56   : > { %s1009_s20 = scalar_lea.vmem %s1008_s26, 512  ;;  %p1010_p5 = scmp.lt.s32.totalorder %s1373_s1, %s1008_s26 }
  0x57   : > { %p1005_p9 = pnand %p1003_p8, %p1332_p3  ;;  %p1011_p12 = scmp.lt.s32.totalorder %s1009_s20, %s1002_s21 }
  0x59   : > { %p1006_p1 = pneg %p1005_p9  ;;  %p1012_p11 = por %p1011_p12, %p1010_p5 }
  0x5b   : > { %p1013_p13 = pnand %p1012_p11, %p1006_p1 }
  0x5d   : > { %1016 = shalt.err (!%p1013_p13)
}
  0x5e   : > { %s1614_s10 = smov 8   ;;  %s1615_s12 = smov 128  }
  0x5f   : > { %865 = dma.hbm_to_vmem [thread:$0]  (!%p1309_p0), %s1370_s7, 256, %s1373_s1, %s1377_s9, %s1615_s12, %s1615_s12, %s1614_s10  }
  0x60   : > { %s1408_s27 = scalar_lea.hbm %s1582_s2, %s1313_s28  ;;  %s262_s21 = scalar_lea.vmem [#allocation7], %s1303_s11 }
  0x61   : > { %s271_s26 = sshll.u32 %s262_s21, 4  ;;  %s1017_s20 = scalar_lea.hbm %s1408_s27, 256  ;;  %s1411_s26 = int_to_ptr.vmem [resolvable:$true] %s271_s26 }
  0x62   : > { %p1018_p12 = scmp.ne.s32.totalorder %s1408_s27, %s1017_s20  ;;  %s1022_s7 = scalar_lea.hbm %s1582_s2, 2048 }
  0x63   : > { %p1023_p4 = scmp.lt.u32.totalorder %s1408_s27, %s1582_s2  ;;  %p1024_p6 = scmp.lt.u32.totalorder %s1022_s7, %s1017_s20 }
  0x64   : > { %p1020_p10 = pnand %p1018_p12, %p1332_p3  ;;  %p1026_p8 = scmp.lt.u32.totalorder %s1017_s20, %s1408_s27 }
  0x65   : > { %p1025_p7 = por %p1024_p6, %p1023_p4 }
  0x66   : > { %p1021_p2 = pneg %p1020_p10 }
  0x67   : > { %p1027_p9 = por %p1026_p8, %p1025_p7 }
  0x69   : > { %p1028_p1 = pnand %p1027_p9, %p1021_p2 }
  0x6b   : > { %1031 = shalt.err (!%p1028_p1)
}
  0x6c   : > { %s1032_s11 = scalar_lea.vmem %s1411_s26, 256  ;;  %s1187_s0 = smov [#allocation7]  }
  0x6d   : > { %p1033_p5 = scmp.ne.s32.totalorder %s1411_s26, %s1032_s11  ;;  %s1037_s6 = sshll.u32 %s1187_s0, 4  ;;  %s1038_s6 = int_to_ptr.vmem [resolvable:$false] %s1037_s6 }
  0x6e   : > { %s1039_s24 = scalar_lea.vmem %s1038_s6, 512  ;;  %p1040_p12 = scmp.lt.s32.totalorder %s1411_s26, %s1038_s6 }
  0x6f   : > { %p1035_p11 = pnand %p1033_p5, %p1332_p3  ;;  %p1041_p10 = scmp.lt.s32.totalorder %s1039_s24, %s1032_s11 }
  0x71   : > { %p1036_p13 = pneg %p1035_p11  ;;  %p1042_p4 = por %p1041_p10, %p1040_p12 }
  0x73   : > { %p1043_p6 = pnand %p1042_p4, %p1036_p13 }
  0x75   : > { %1046 = shalt.err (!%p1043_p6)
}
  0x76   : > { %871 = dma.hbm_to_vmem [thread:$0]  (!%p1309_p0), %s1408_s27, 256, %s1411_s26, %s1326_s25, %s1615_s12, %s1615_s12, %s1614_s10  }
  0x77   : > { %p1616_p3 = scmp.ne.s32.totalorder %s1611_s29, 0 }
  0x78   : > { %s1441_s13 = sand.u32 (!%p1616_p3), 1, %s1157_s16   ;;  %p1617_p2 = scmp.ne.s32.totalorder (!%p1616_p3), %s1603_s30, 0 }
  0x79   : > { %283 = sbr.rel (%p1616_p3) target bundleno = 901 (0x385), region = 32  ;;  %s1444_s21 = sshll.u32 (!%p1616_p3), %s1441_s13, 4 }
  0x7a   : > { %s286_s14 = scalar_lea.sflag (!%p1616_p3), [#allocation3], %s1441_s13  ;;  %s289_s20 = scalar_lea.vmem (!%p1616_p3), [#allocation2], %s1444_s21 }
  0x80   : > { %1136 = dma.done.wait (%p1617_p2), %s286_s14, 256  }
  0x81   : > { %1138 = vsyncadd (%p1617_p2), %s286_s14, 4294967040  ;;  %s294_s25 = sand.u32 1, %s1258_s23   ;;  %s298_s10 = scalar_lea.vmem [#allocation5], %s1444_s21 }
  0x82   : > { %s295_s29 = scalar_lea.sflag [#allocation6], %s294_s25 }
  0x83   : > { %1140 = dma.done.wait (%p1617_p2), %s295_s29, 512  }
  0x84   : > { %1142 = vsyncadd (%p1617_p2), %s295_s29, 4294966784  ;;  %vm358_vm0 = vcmask 261120   ;;  %v352_v0 = vld [vmem:[%s298_s10] sm:$0xff]  ;;  %v353_v1 = vld [vmem:[%s298_s10 + $0x8] sm:$0xff]  ;;  %vm446_vm2 = vcmask 130048   ;;  %s307_s23 = scalar_lea.vmem [#allocation7], %s1444_s21 }
  0x85   : > { %vm843_vm1 = vmpackc.low %vm358_vm0, %vm358_vm0  ;;  %v350_v2 = vld [vmem:[%s289_s20] sm:$0xff]  ;;  %v842_v3 = vpack.c.bf16 %v353_v1, %v352_v0  ;;  %v351_v5 = vld [vmem:[%s289_s20 + $0x8] sm:$0xff]  ;;  %s346_s30 = scalar_lea.vmem [#allocation9], %s1444_s21  ;;  %s812_s12 = sshll.u32 %s1165_s18, 1 }
  0x86   : > { %v356_v4 = vmul.f32 0.17677669, %v350_v2  ;;  %v357_v6 = vmul.f32 0.17677669, %v351_v5  ;;  %v354_v21 = vld [vmem:[%s307_s23] sm:$0xff]  ;;  %v355_v22 = vld [vmem:[%s307_s23 + $0x8] sm:$0xff] }
  0x87   : > { %844 = vmatprep.subr.msk.bf16.mxu0 %vm843_vm1, %v842_v3  ;;  %v848_v23 = vpack.c.bf16 %v355_v22, %v354_v21  ;;  %s813_s27 = sshll.u32 %s1169_s19, 3  ;;  %s599_s11 = sshll.u32 %s346_s30, 4  ;;  %s1484_s11 = int_to_ptr.vmem [resolvable:$true] %s599_s11 }
  0x88   : > { %832 = vmatprep.mubr.msk.f32.mxu0 %vm358_vm0, %v356_v4  ;;  %847 = vmatpush3.bf16.xpose.msk.msra.mxu0 %vm843_vm1, %v842_v3  ;;  %s1474_s26 = sadd.s32 %s813_s27, %s812_s12  ;;  %s562_s0 = scalar_lea.sflag [#allocation10], %s1441_s13 }
  0x89   : > { %849 = vmatprep.subr.bf16.mxu1 %v848_v23  ;;  %s814_s1 = sshll.u32 %s1474_s26, 7  ;;  %s1047_s18 = scalar_lea.vmem %s1484_s11, 256 }
  0x8a   : > { %851 = vmatpush3.bf16.msra.mxu1 %v848_v23  ;;  %s1482_s28 = scalar_lea.hbm %s1584_s4, %s814_s1  ;;  %p1048_p0 = scmp.ne.s32.totalorder %s1484_s11, %s1047_s18 }
  0x8b   : > { %p1618_p7 = scmp.ne.s32.totalorder %s1604_s5, 0  ;;  %s1188_s19 = smov [#allocation9]  }
  0x8c   : > { %s1051_s6 = sshll.u32 %s1188_s19, 4  ;;  %s1052_s6 = int_to_ptr.vmem [resolvable:$false] %s1051_s6 }
  0x8d   : > { %p1049_p8 = pnand %p1048_p0, %p1618_p7  ;;  %s1053_s24 = scalar_lea.vmem %s1052_s6, 512 }
  0x8e   : > { %p1054_p1 = scmp.lt.s32.totalorder %s1484_s11, %s1052_s6  ;;  %p1055_p5 = scmp.lt.s32.totalorder %s1053_s24, %s1047_s18 }
  0x8f   : > { %833 = vmatmul.mubr.msk.f32.vlgmr.msra.gmra.mrb[0].mxu0 %vm358_vm0, %v357_v6  ;;  %p1050_p9 = pneg %p1049_p8 }
  0x90   : > { %p1056_p11 = por %p1055_p5, %p1054_p1 }
  0x92   : > { %p1057_p13 = pnand %p1056_p11, %p1050_p9 }
 0x162   : > { %v834_v7 = vpop.f32.mrb[0].mxu0 }
 0x163   : > { %v437_v8 = vpop.f32.mrb[1].mxu0  ;;  %v450_v10 = vsel %vm446_vm2, %v834_v7, -inf }
 0x164   : > { %v447_v9 = vsel %vm446_vm2, %v437_v8, -inf }
 0x165   : > { %448 = vmax.xlane.f32.xlu0 %v447_v9 }
 0x169   : > { %451 = vmax.xlane.f32.xlu0 %v450_v10 }
 0x1f2   : > { %v449_v11 = vpop.xlane.xlu0 %448 }
 0x1f3   : > { %v453_v12 = vsub.f32 %v437_v8, %v449_v11 }
 0x1f5   : > { %v455_v13 = vmul.f32 1.442695, %v453_v12 }
 0x1f6   : > { %v452_v14 = vpop.xlane.xlu0 %451 }
 0x1f7   : > { %949 = vpow2.f32 %v455_v13  ;;  %v454_v15 = vsub.f32 %v834_v7, %v452_v14 }
 0x1f9   : > { %v457_v16 = vmul.f32 1.442695, %v454_v15 }
 0x1fb   : > { %951 = vpow2.f32 %v457_v16 }
 0x201   : > { %v950_v17 = vpop.eup %949 }
 0x202   : > { %v459_v18 = vsel %vm446_vm2, %v950_v17, 0.0 }
 0x203   : > { %460 = vadd.xlane.f32.xlu1 %v459_v18 }
 0x205   : > { %v952_v19 = vpop.eup %951 }
 0x206   : > { %v462_v20 = vsel %vm446_vm2, %v952_v19, 0.0 }
 0x207   : > { %463 = vadd.xlane.f32.xlu1 %v462_v20 }
 0x290   : > { %v461_v24 = vpop.xlane.xlu1 %460 }
 0x291   : > { %953 = vrcp.f32 %v461_v24 }
 0x294   : > { %v464_v25 = vpop.xlane.xlu1 %463 }
 0x295   : > { %955 = vrcp.f32 %v464_v25 }
 0x29b   : > { %v954_v26 = vpop.eup %953 }
 0x29c   : > { %v469_v27 = vmul.f32 %v954_v26, %v950_v17 }
 0x29e   : > { %839 = vmatprep.mubr.msk.f32.mxu1 %vm446_vm2, %v469_v27  ;;  %554 = vst.msk [vmem:[%s346_s30] sm:$0xff] %vm446_vm2, %v469_v27 }
 0x29f   : > { %v956_v28 = vpop.eup %955 }
 0x2a0   : > { %v470_v29 = vmul.f32 %v956_v28, %v952_v19 }
 0x2a2   : > { %840 = vmatmul.mubr.msk.f32.vlgmr.msra.gmra.mrb[0].mxu1 %vm446_vm2, %v470_v29  ;;  %555 = vst.msk [vmem:[%s346_s30 + $0x8] sm:$0xff] %vm446_vm2, %v470_v29 }
 0x2a3   : > { %1060 = shalt.err (!%p1057_p13)
}
 0x2a4   : > { %s1061_s14 = scalar_lea.hbm %s1482_s28, 256  ;;  %s1065_s29 = scalar_lea.hbm %s1584_s4, 2048 }
 0x2a5   : > { %p1062_p12 = scmp.ne.s32.totalorder %s1482_s28, %s1061_s14  ;;  %p1066_p6 = scmp.lt.u32.totalorder %s1482_s28, %s1584_s4 }
 0x2a6   : > { %p1067_p3 = scmp.lt.u32.totalorder %s1065_s29, %s1061_s14  ;;  %p1069_p0 = scmp.lt.u32.totalorder %s1061_s14, %s1482_s28 }
 0x2a7   : > { %p1063_p10 = pnand %p1062_p12, %p1618_p7 }
 0x2a8   : > { %p1068_p2 = por %p1067_p3, %p1066_p6 }
 0x2a9   : > { %p1064_p4 = pneg %p1063_p10 }
 0x2aa   : > { %p1070_p8 = por %p1069_p0, %p1068_p2 }
 0x2ac   : > { %p1071_p9 = pnand %p1070_p8, %p1064_p4 }
 0x2ae   : > { %1074 = shalt.err (!%p1071_p9)
}
 0x2af   : > { %s1189_s30 = smov 128   ;;  %s1190_s12 = smov 8  }
 0x2b0   : > { %859 = dma.vmem_to_hbm [thread:$0]  (%p1618_p7), %s1484_s11, 256, %s1482_s28, %s562_s0, %s1189_s30, %s1189_s30, %s1190_s12  }
 0x2b1   : > { %s339_s27 = scalar_lea.vmem [#allocation8], %s1444_s21  ;;  %s1521_s19 = scalar_lea.hbm %s1583_s3, %s814_s1 }
 0x2b2   : > { %s579_s7 = sshll.u32 %s339_s27, 4  ;;  %s557_s28 = scalar_lea.sflag [#allocation4], %s1441_s13  ;;  %s1514_s7 = int_to_ptr.vmem [resolvable:$true] %s579_s7 }
 0x2b3   : > { %s1075_s21 = scalar_lea.vmem %s1514_s7, 256  ;;  %s1191_s11 = smov [#allocation8]  }
 0x2b4   : > { %p1076_p1 = scmp.ne.s32.totalorder %s1514_s7, %s1075_s21  ;;  %s1079_s0 = sshll.u32 %s1191_s11, 4  ;;  %s1080_s0 = int_to_ptr.vmem [resolvable:$false] %s1079_s0 }
 0x2b5   : > { %s1081_s26 = scalar_lea.vmem %s1080_s0, 512  ;;  %p1082_p13 = scmp.lt.s32.totalorder %s1514_s7, %s1080_s0 }
 0x2b6   : > { %p1077_p5 = pnand %p1076_p1, %p1618_p7  ;;  %p1083_p12 = scmp.lt.s32.totalorder %s1081_s26, %s1075_s21 }
 0x2b8   : > { %p1078_p11 = pneg %p1077_p5  ;;  %p1084_p10 = por %p1083_p12, %p1082_p13 }
 0x2ba   : > { %p1085_p4 = pnand %p1084_p10, %p1078_p11 }
 0x375   : > { %v841_v30 = vpop.f32.mrb[0].mxu1 }
 0x376   : > { %553 = vst.msk [vmem:[%s339_s27 + $0x8] sm:$0xff] %vm358_vm0, %v841_v30  ;;  %v543_v31 = vpop.f32.mrb[1].mxu1 }
 0x377   : > { %552 = vst.msk [vmem:[%s339_s27] sm:$0xff] %vm358_vm0, %v543_v31 }
 0x378   : > { %1088 = shalt.err (!%p1085_p4)
}
 0x379   : > { %s1089_s1 = scalar_lea.hbm %s1521_s19, 256  ;;  %s1093_s14 = scalar_lea.hbm %s1583_s3, 2048 }
 0x37a   : > { %p1090_p6 = scmp.ne.s32.totalorder %s1521_s19, %s1089_s1  ;;  %p1094_p0 = scmp.lt.u32.totalorder %s1521_s19, %s1583_s3 }
 0x37b   : > { %p1095_p8 = scmp.lt.u32.totalorder %s1093_s14, %s1089_s1  ;;  %p1097_p1 = scmp.lt.u32.totalorder %s1089_s1, %s1521_s19 }
 0x37c   : > { %p1091_p3 = pnand %p1090_p6, %p1618_p7 }
 0x37d   : > { %p1096_p9 = por %p1095_p8, %p1094_p0 }
 0x37e   : > { %p1092_p2 = pneg %p1091_p3 }
 0x37f   : > { %p1098_p5 = por %p1097_p1, %p1096_p9 }
 0x381   : > { %p1099_p11 = pnand %p1098_p5, %p1092_p2 }
 0x383   : > { %1102 = shalt.err (!%p1099_p11)
}
 0x384   : > { %858 = dma.vmem_to_hbm [thread:$0]  (%p1618_p7), %s1514_s7, 256, %s1521_s19, %s557_s28, %s1189_s30, %s1189_s30, %s1190_s12  }
 0x385 PF: > { %p880_p13 = scmp.ge.s32.totalorder %s1181_s22, 2  ;;  %s614_s29 = sand.u32 1, %s1153_s15  }
 0x386   : > { %p1619_p12 = scmp.ne.s32.totalorder %s1605_s8, 0  ;;  %s615_s10 = scalar_lea.sflag [#allocation4], %s614_s29 }
 0x388   : > { %p873_p10 = pnand %p880_p13, %p1619_p12 }
 0x38a   : > { %1144 = dma.done.wait (!%p873_p10), %s615_s10, 256  }
 0x38b   : > { %1146 = vsyncadd (!%p873_p10), %s615_s10, 4294967040  ;;  %s624_s5 = scalar_lea.sflag [#allocation10], %s614_s29 }
 0x38c   : > { %1148 = dma.done.wait (!%p873_p10), %s624_s5, 256  }
 0x38d   : > { %1150 = vsyncadd (!%p873_p10), %s624_s5, 4294967040  ;;  %s27_s22 = sadd.s32 1, %s1181_s22   ;;  %s1620_s13 = sld [smem:[#allocation19_spill]] }
 0x38e   : > { %p24_p4 = scmp.ge.s32.totalorder %s27_s22, 10   ;;  %s1621_s18 = sld [smem:[#allocation15_spill]] }
 0x38f   : > { %s1622_s19 = sld [smem:[#allocation16_spill]]  ;;  %s1623_s20 = sld [smem:[#allocation17_spill]] }
 0x390   : > { %s1624_s21 = sld [smem:[#allocation18_spill]]  ;;  %s1625_s15 = smov %s1157_s16 }
 0x391   : > { %s1626_s16 = smov %s1161_s17  ;;  %26 = sbr.rel (!%p24_p4) target bundleno = 14 (0xe), region = 118 }
 0x393   : > { %s1627_s17 = smov %s1620_s13 }
 0x398   :  { %629 = vsyncpa [#allocation3], 1 }
 0x399   :  { %631 = vsyncpa [#allocation3 + $0x1], 1 }
 0x39a   :  { %632 = vsyncpa [#allocation6], 1 }
 0x39b   :  { %634 = vsyncpa [#allocation6 + $0x1], 1 }
 0x39c   :  { %635 = vsyncpa [#allocation4], 1 }
 0x39d   :  { %637 = vsyncpa [#allocation4 + $0x1], 1 }
 0x39e   :  { %638 = vsyncpa [#allocation10], 1 }
 0x39f   :  { %640 = vsyncpa [#allocation10 + $0x1], 1 }

</bundles_post_ra>
